<compile_context>
chip_gen: v6e
topology: v6e:2x2x1
jax: 0.10.0
libtpu: 0.0.40
codegen_flags: <defaults>
</compile_context>

<pallas_src>
import math

import jax
import jax.numpy as jnp
from jax.experimental import pallas as pl
from jax.experimental.pallas import tpu as pltpu


def _mingru_kernel(x_ref, h_ref, h_cols_ref, wzx_ref, wzh_ref, wox_ref,
                   woh_ref, bz_ref, bo_ref, out_ref):
    """One (batch-tile, hidden-column-tile) block of the MinGRU cell.

    x_ref      : (TB, I)   input tile
    h_ref      : (TB, H)   previous hidden tile (all columns, matmul K operand)
    h_cols_ref : (TB, TN)  previous hidden restricted to this column tile
                           (may be the same ref as h_ref when TN == H)
    wzx_ref    : (I, TN)   update-gate weight, x part
    wzh_ref    : (H, TN)   update-gate weight, h part
    wox_ref    : (I, TN)   output-gate weight, x part
    woh_ref    : (H, TN)   output-gate weight, h part
    bz_ref     : (1, TN)   update-gate bias
    bo_ref     : (1, TN)   output-gate bias
    out_ref    : (TB, TN)  new hidden tile
    """
    x = x_ref[...]
    h_native = h_ref[...]

    # Gate pre-activations for this column tile: MXU in the inputs' native
    # dtype, f32 accumulation.
    lin_z = (jnp.dot(x, wzx_ref[...], preferred_element_type=jnp.float32)
             + jnp.dot(h_native, wzh_ref[...], preferred_element_type=jnp.float32)
             + bz_ref[...].astype(jnp.float32))
    lin_o = (jnp.dot(x, wox_ref[...], preferred_element_type=jnp.float32)
             + jnp.dot(h_native, woh_ref[...], preferred_element_type=jnp.float32)
             + bo_ref[...].astype(jnp.float32))

    z = jax.nn.sigmoid(lin_z)        # update gate       (EUP)
    h_tilde = jnp.tanh(lin_o)        # candidate state   (EUP)

    h_cols = h_cols_ref[...].astype(jnp.float32)
    # (1 - z) * h + z * h_tilde  ==  h + z * (h_tilde - h)
    out_ref[...] = (h_cols + z * (h_tilde - h_cols)).astype(out_ref.dtype)


def _mingru_kernel_single(x_ref, h_ref, wzx_ref, wzh_ref, wox_ref, woh_ref,
                          bz_ref, bo_ref, out_ref):
    """Variant for the single column-tile case (TN == H): h itself is the blend input."""
    _mingru_kernel(x_ref, h_ref, h_ref, wzx_ref, wzh_ref, wox_ref, woh_ref,
                   bz_ref, bo_ref, out_ref)


def _dtype_bytes(dt):
    return jnp.dtype(dt).itemsize


def _block_vmem_bytes(tb, tn, in_size, hidden_size, x_dt, h_dt, w_dt, out_dt):
    """Conservative per-call scoped-VMEM estimate (double-buffered blocks)."""
    acts = 2 * tb * (in_size * _dtype_bytes(x_dt) + hidden_size * _dtype_bytes(h_dt))
    acts += 2 * tb * tn * _dtype_bytes(h_dt)                      # column view of h
    wts = 2 * 2 * (in_size + hidden_size) * tn * _dtype_bytes(w_dt)
    bias = 2 * 2 * tn * _dtype_bytes(w_dt)
    outs = 2 * tb * tn * _dtype_bytes(out_dt)
    interm = 6 * tb * tn * 4                                      # f32 lin/z/h_tilde/blend
    return acts + wts + bias + outs + interm + (2 << 20)


def _vmem_cap_bytes():
    """~75% of physical VMEM (96 MiB v5e/v6e, 48 MiB v7x); 48 MiB safe fallback."""
    try:
        phys = int(getattr(pltpu.get_tpu_info(), "vmem_capacity_bytes", 0) or 0)
        if phys > 0:
            return (phys * 3) // 4
    except Exception:
        pass
    return 48 << 20


def _choose_tiles(batch, in_size, hidden_size, block_b, x_dt, h_dt, w_dt, out_dt, cap):
    # Batch tile: large tiles for bandwidth, but at least 2 grid steps when the
    # batch allows it so both v7x TensorCores get work.
    if batch <= block_b:
        tb0 = batch // 2 if (batch >= 16 and batch % 16 == 0) else batch
    else:
        tb0 = block_b
    tb_candidates = [tb0]
    t = tb0
    while t >= 128 and (t // 2) % 8 == 0:
        t //= 2
        tb_candidates.append(t)

    # Hidden-column tile: full H if it fits VMEM, otherwise a lane-aligned divisor.
    tn_candidates = [hidden_size]
    for c in (512, 256, 128):
        if c < hidden_size and hidden_size % c == 0:
            tn_candidates.append(c)

    for tb in tb_candidates:
        for tn in tn_candidates:
            if _block_vmem_bytes(tb, tn, in_size, hidden_size,
                                 x_dt, h_dt, w_dt, out_dt) <= cap:
                return tb, tn
    return tb_candidates[-1], tn_candidates[-1]


def mingru_cell(x, hidden, params, *, block_b=512, block_h=None, compute_dtype=None):
    """Forward pass of MinGRUCell via a (batch, hidden-column)-tiled Pallas kernel."""
    B, I = x.shape
    Bh, H = hidden.shape
    assert B == Bh
    wzx, wzh, wox, woh, bz, bo = (params[k] for k in
                                  ("wzx", "wzh", "wox", "woh", "bz", "bo"))
    assert wzx.shape == (I, H) and wox.shape == (I, H)
    assert wzh.shape == (H, H) and woh.shape == (H, H)
    assert bz.shape == (1, H) and bo.shape == (1, H)

    out_dtype = hidden.dtype
    if compute_dtype is not None:
        # e.g. jnp.bfloat16 on v6e/v7x: halves weight HBM/VMEM traffic, ~4x MXU rate.
        x, hidden = x.astype(compute_dtype), hidden.astype(compute_dtype)
        wzx, wzh, wox, woh = (w.astype(compute_dtype) for w in (wzx, wzh, wox, woh))
        bz, bo = bz.astype(compute_dtype), bo.astype(compute_dtype)

    cap = _vmem_cap_bytes()
    tb, tn = _choose_tiles(B, I, H, block_b, x.dtype, hidden.dtype, wzx.dtype,
                           out_dtype, cap)
    if block_h is not None:
        assert H % block_h == 0 and (block_h % 128 == 0 or block_h == H)
        tn = block_h

    budget = _block_vmem_bytes(tb, tn, I, H, x.dtype, hidden.dtype, wzx.dtype, out_dtype)
    vmem_limit = int(min(max(budget, 32 << 20), cap))

    nb, nn = pl.cdiv(B, tb), H // tn
    grid = (nb, nn)

    batch_map = lambda i, n: (i, 0)   # x / h: march down the batch, all columns
    col_map = lambda i, n: (0, n)     # weights / bias: march across hidden columns
    out_map = lambda i, n: (i, n)

    x_spec = pl.BlockSpec((tb, I), batch_map)
    h_spec = pl.BlockSpec((tb, H), batch_map)
    w_specs = [
        pl.BlockSpec((I, tn), col_map),   # Wz, x part
        pl.BlockSpec((H, tn), col_map),   # Wz, h part
        pl.BlockSpec((I, tn), col_map),   # Wo, x part
        pl.BlockSpec((H, tn), col_map),   # Wo, h part
        pl.BlockSpec((1, tn), col_map),   # bz
        pl.BlockSpec((1, tn), col_map),   # bo
    ]

    if nn > 1:
        # Second (column-tiled) view of hidden for the blend; avoids any
        # dynamic lane-dim indexing inside the kernel.
        kernel = _mingru_kernel
        in_specs = [x_spec, h_spec, pl.BlockSpec((tb, tn), out_map)] + w_specs
        operands = (x, hidden, hidden, wzx, wzh, wox, woh, bz, bo)
    else:
        kernel = _mingru_kernel_single
        in_specs = [x_spec, h_spec] + w_specs
        operands = (x, hidden, wzx, wzh, wox, woh, bz, bo)

    return pl.pallas_call(
        kernel,
        out_shape=jax.ShapeDtypeStruct((B, H), out_dtype),
        grid=grid,
        in_specs=in_specs,
        out_specs=pl.BlockSpec((tb, tn), out_map),
        compiler_params=pltpu.CompilerParams(
            dimension_semantics=("parallel", "arbitrary"),
            vmem_limit_bytes=vmem_limit,
        ),
    )(*operands)


def init_params(key, input_size, hidden_size, dtype=jnp.float32):
    """Xavier-uniform weights (matching nn.init.xavier_uniform_), zero biases.

    PyTorch's Linear(I+H, H) weight is (H, I+H); we store it transposed as
    (I+H, H) and split the input axis into its x / h parts so the kernel never
    has to concatenate activations.
    """
    fan_in = input_size + hidden_size
    fan_out = hidden_size
    bound = math.sqrt(6.0 / (fan_in + fan_out))
    kz, ko = jax.random.split(key)
    wz = jax.random.uniform(kz, (fan_in, fan_out), jnp.float32, -bound, bound).astype(dtype)
    wo = jax.random.uniform(ko, (fan_in, fan_out), jnp.float32, -bound, bound).astype(dtype)
    return dict(
        wzx=wz[:input_size], wzh=wz[input_size:],
        wox=wo[:input_size], woh=wo[input_size:],
        bz=jnp.zeros((1, fan_out), dtype), bo=jnp.zeros((1, fan_out), dtype),
    )


def mingru_ref(x, hidden, params):
    """Plain-JAX reference matching the PyTorch forward (f32 accumulate)."""
    lin_z = (jnp.dot(x, params["wzx"], preferred_element_type=jnp.float32)
             + jnp.dot(hidden, params["wzh"], preferred_element_type=jnp.float32)
             + params["bz"].astype(jnp.float32))
    lin_o = (jnp.dot(x, params["wox"], preferred_element_type=jnp.float32)
             + jnp.dot(hidden, params["woh"], preferred_element_type=jnp.float32)
             + params["bo"].astype(jnp.float32))
    z = jax.nn.sigmoid(lin_z)
    h_tilde = jnp.tanh(lin_o)
    h = hidden.astype(jnp.float32)
    return ((1.0 - z) * h + z * h_tilde).astype(hidden.dtype)


if __name__ == "__main__":
    # --- small shapes (module-scale smoke test) ------------------------------
    batch, input_size, hidden_size = 2, 16, 32
    kx, kh, kp = jax.random.split(jax.random.PRNGKey(0), 3)

    x = jax.random.normal(kx, (batch, input_size), jnp.float32)
    hidden = jax.random.normal(kh, (batch, hidden_size), jnp.float32)
    params = init_params(kp, input_size, hidden_size)

    out = jax.block_until_ready(mingru_cell(x, hidden, params))
    ref = mingru_ref(x, hidden, params)
    assert out.shape == (batch, hidden_size)
    assert out.dtype == hidden.dtype
    assert jnp.allclose(out, ref, atol=1e-5, rtol=1e-5), "small-shape mismatch"

    # --- larger aligned shapes: exercises batch tiling AND hidden-column tiling
    B2, I2, H2 = 512, 256, 256
    k2x, k2h, k2p = jax.random.split(jax.random.PRNGKey(1), 3)
    x2 = jax.random.normal(k2x, (B2, I2), jnp.float32)
    h2 = jax.random.normal(k2h, (B2, H2), jnp.float32)
    p2 = init_params(k2p, I2, H2)

    out2 = jax.block_until_ready(mingru_cell(x2, h2, p2, block_h=128))
    ref2 = mingru_ref(x2, h2, p2)
    assert out2.shape == (B2, H2)
    assert jnp.allclose(out2, ref2, atol=1e-3, rtol=1e-3), "tiled-shape mismatch"

    print("KERNEL_OK")
</pallas_src>

<mosaic_0001>
module attributes {stable_mosaic.version = 11 : i64} {
  func.func @_mingru_kernel_single(%arg0: i32, %arg1: i32, %arg2: memref<2x16xf32, #tpu.memory_space<vmem>>, %arg3: memref<2x32xf32, #tpu.memory_space<vmem>>, %arg4: memref<16x32xf32, #tpu.memory_space<vmem>>, %arg5: memref<32x32xf32, #tpu.memory_space<vmem>>, %arg6: memref<16x32xf32, #tpu.memory_space<vmem>>, %arg7: memref<32x32xf32, #tpu.memory_space<vmem>>, %arg8: memref<1x32xf32, #tpu.memory_space<vmem>>, %arg9: memref<1x32xf32, #tpu.memory_space<vmem>>, %arg10: memref<2x32xf32, #tpu.memory_space<vmem>>) attributes {dimension_semantics = [#tpu.dimension_semantics<parallel>, #tpu.dimension_semantics<arbitrary>], iteration_bounds = array<i64: 1, 1>, scalar_prefetch = 0 : i64, scratch_operands = 0 : i64, tpu.core_type = #tpu.core_type<tc>, window_params = [{transform_indices = @transform_0, window_bounds = array<i64: 2, 16>}, {transform_indices = @transform_1, window_bounds = array<i64: 2, 32>}, {transform_indices = @transform_2, window_bounds = array<i64: 16, 32>}, {transform_indices = @transform_3, window_bounds = array<i64: 32, 32>}, {transform_indices = @transform_4, window_bounds = array<i64: 16, 32>}, {transform_indices = @transform_5, window_bounds = array<i64: 32, 32>}, {transform_indices = @transform_6, window_bounds = array<i64: 1, 32>}, {transform_indices = @transform_7, window_bounds = array<i64: 1, 32>}, {transform_indices = @transform_8, window_bounds = array<i64: 2, 32>}]} {
    %c0 = arith.constant 0 : index
    %c0_0 = arith.constant 0 : index
    %0 = vector.load %arg2[%c0, %c0_0] : memref<2x16xf32, #tpu.memory_space<vmem>>, vector<2x16xf32>
    %c0_1 = arith.constant 0 : index
    %c0_2 = arith.constant 0 : index
    %1 = vector.load %arg3[%c0_1, %c0_2] : memref<2x32xf32, #tpu.memory_space<vmem>>, vector<2x32xf32>
    %c0_3 = arith.constant 0 : index
    %c0_4 = arith.constant 0 : index
    %2 = vector.load %arg4[%c0_3, %c0_4] : memref<16x32xf32, #tpu.memory_space<vmem>>, vector<16x32xf32>
    %cst = arith.constant dense<0.000000e+00> : vector<2x32xf32>
    %3 = tpu.matmul %0, %2, %cst {dimension_numbers = #tpu.dot_dimension_numbers<[1], [0], [0], [1], [0, 0, 1, 1], [], []>} : vector<2x16xf32>, vector<16x32xf32>, vector<2x32xf32> -> vector<2x32xf32>
    %c0_5 = arith.constant 0 : index
    %c0_6 = arith.constant 0 : index
    %4 = vector.load %arg5[%c0_5, %c0_6] : memref<32x32xf32, #tpu.memory_space<vmem>>, vector<32x32xf32>
    %cst_7 = arith.constant dense<0.000000e+00> : vector<2x32xf32>
    %5 = tpu.matmul %1, %4, %cst_7 {dimension_numbers = #tpu.dot_dimension_numbers<[1], [0], [0], [1], [0, 0, 1, 1], [], []>} : vector<2x32xf32>, vector<32x32xf32>, vector<2x32xf32> -> vector<2x32xf32>
    %6 = arith.addf %3, %5 : vector<2x32xf32>
    %c0_8 = arith.constant 0 : index
    %c0_9 = arith.constant 0 : index
    %7 = vector.load %arg8[%c0_8, %c0_9] : memref<1x32xf32, #tpu.memory_space<vmem>>, vector<1x32xf32>
    %8 = vector.broadcast %7 : vector<1x32xf32> to vector<2x32xf32>
    %9 = arith.addf %6, %8 : vector<2x32xf32>
    %c0_10 = arith.constant 0 : index
    %c0_11 = arith.constant 0 : index
    %10 = vector.load %arg6[%c0_10, %c0_11] : memref<16x32xf32, #tpu.memory_space<vmem>>, vector<16x32xf32>
    %cst_12 = arith.constant dense<0.000000e+00> : vector<2x32xf32>
    %11 = tpu.matmul %0, %10, %cst_12 {dimension_numbers = #tpu.dot_dimension_numbers<[1], [0], [0], [1], [0, 0, 1, 1], [], []>} : vector<2x16xf32>, vector<16x32xf32>, vector<2x32xf32> -> vector<2x32xf32>
    %c0_13 = arith.constant 0 : index
    %c0_14 = arith.constant 0 : index
    %12 = vector.load %arg7[%c0_13, %c0_14] : memref<32x32xf32, #tpu.memory_space<vmem>>, vector<32x32xf32>
    %cst_15 = arith.constant dense<0.000000e+00> : vector<2x32xf32>
    %13 = tpu.matmul %1, %12, %cst_15 {dimension_numbers = #tpu.dot_dimension_numbers<[1], [0], [0], [1], [0, 0, 1, 1], [], []>} : vector<2x32xf32>, vector<32x32xf32>, vector<2x32xf32> -> vector<2x32xf32>
    %14 = arith.addf %11, %13 : vector<2x32xf32>
    %c0_16 = arith.constant 0 : index
    %c0_17 = arith.constant 0 : index
    %15 = vector.load %arg9[%c0_16, %c0_17] : memref<1x32xf32, #tpu.memory_space<vmem>>, vector<1x32xf32>
    %16 = vector.broadcast %15 : vector<1x32xf32> to vector<2x32xf32>
    %17 = arith.addf %14, %16 : vector<2x32xf32>
    %18 = arith.negf %9 : vector<2x32xf32>
    %19 = math.exp %18 : vector<2x32xf32>
    %cst_18 = arith.constant 1.000000e+00 : f32
    %20 = vector.broadcast %cst_18 : f32 to vector<2x32xf32>
    %21 = arith.addf %20, %19 : vector<2x32xf32>
    %22 = arith.divf %20, %21 : vector<2x32xf32>
    %23 = math.tanh %17 : vector<2x32xf32>
    %c0_19 = arith.constant 0 : index
    %c0_20 = arith.constant 0 : index
    %24 = vector.load %arg3[%c0_19, %c0_20] : memref<2x32xf32, #tpu.memory_space<vmem>>, vector<2x32xf32>
    %25 = arith.subf %23, %24 : vector<2x32xf32>
    %26 = arith.mulf %22, %25 : vector<2x32xf32>
    %27 = arith.addf %24, %26 : vector<2x32xf32>
    %c0_21 = arith.constant 0 : index
    %c0_22 = arith.constant 0 : index
    %28 = vector.load %arg10[%c0_21, %c0_22] : memref<2x32xf32, #tpu.memory_space<vmem>>, vector<2x32xf32>
    tpu.vector_store %arg10[%c0_21, %c0_22], %27 {strides = array<i32>} : memref<2x32xf32, #tpu.memory_space<vmem>>, vector<2x32xf32>,
    return
  }
  func.func @transform_0(%arg0: i32, %arg1: i32) -> (i32, i32) {
    %c0_i32 = arith.constant 0 : i32
    %c0_i32_0 = arith.constant 0 : i32
    return %arg0, %c0_i32 : i32, i32
  }
  func.func @transform_1(%arg0: i32, %arg1: i32) -> (i32, i32) {
    %c0_i32 = arith.constant 0 : i32
    %c0_i32_0 = arith.constant 0 : i32
    return %arg0, %c0_i32 : i32, i32
  }
  func.func @transform_2(%arg0: i32, %arg1: i32) -> (i32, i32) {
    %c0_i32 = arith.constant 0 : i32
    %c0_i32_0 = arith.constant 0 : i32
    return %c0_i32, %arg1 : i32, i32
  }
  func.func @transform_3(%arg0: i32, %arg1: i32) -> (i32, i32) {
    %c0_i32 = arith.constant 0 : i32
    %c0_i32_0 = arith.constant 0 : i32
    return %c0_i32, %arg1 : i32, i32
  }
  func.func @transform_4(%arg0: i32, %arg1: i32) -> (i32, i32) {
    %c0_i32 = arith.constant 0 : i32
    %c0_i32_0 = arith.constant 0 : i32
    return %c0_i32, %arg1 : i32, i32
  }
  func.func @transform_5(%arg0: i32, %arg1: i32) -> (i32, i32) {
    %c0_i32 = arith.constant 0 : i32
    %c0_i32_0 = arith.constant 0 : i32
    return %c0_i32, %arg1 : i32, i32
  }
  func.func @transform_6(%arg0: i32, %arg1: i32) -> (i32, i32) {
    %c0_i32 = arith.constant 0 : i32
    %c0_i32_0 = arith.constant 0 : i32
    return %c0_i32, %arg1 : i32, i32
  }
  func.func @transform_7(%arg0: i32, %arg1: i32) -> (i32, i32) {
    %c0_i32 = arith.constant 0 : i32
    %c0_i32_0 = arith.constant 0 : i32
    return %c0_i32, %arg1 : i32, i32
  }
  func.func @transform_8(%arg0: i32, %arg1: i32) -> (i32, i32) {
    %c0_i32 = arith.constant 0 : i32
    return %arg0, %arg1 : i32, i32
  }
}

</mosaic_0001>

<bundles_post_ra>
// kernel: tpu_custom_call.1
= control target key start
LH: loop header
LB: loop body
LE: loop exit
PB: predicated region body
PF: predicated region fallthrough
CT: control target
= control target key end

     0   :  { %13 = vsyncpa [#allocation3], 0  ;;  %s785_s0 = inlined_call_operand.hbm [shape: f32[2,16], index: 0, kind: input, shape index: {}]   ;;  %s786_s1 = inlined_call_operand.hbm [shape: f32[2,32], index: 1, kind: input, shape index: {}]   ;;  %s787_s2 = inlined_call_operand.hbm [shape: f32[16,32], index: 2, kind: input, shape index: {}]   ;;  %s788_s3 = inlined_call_operand.hbm [shape: f32[32,32], index: 3, kind: input, shape index: {}]   ;;  %s789_s4 = inlined_call_operand.hbm [shape: f32[16,32], index: 4, kind: input, shape index: {}]   ;;  %s790_s5 = inlined_call_operand.hbm [shape: f32[32,32], index: 5, kind: input, shape index: {}]   ;;  %s791_s6 = inlined_call_operand.vmem [shape: f32[1,32], index: 6, kind: input, shape index: {}]   ;;  %s792_s7 = inlined_call_operand.vmem [shape: f32[1,32], index: 7, kind: input, shape index: {}]   ;;  %s793_s8 = inlined_call_operand.hbm [shape: f32[2,32], index: 8, kind: output, shape index: {}]  }
   0x1   :  { %14 = vsyncpa [#allocation6], 0 }
   0x2   :  { %15 = vsyncpa [#allocation9], 0 }
   0x3   :  { %16 = vsyncpa [#allocation12], 0 }
   0x4   :  { %17 = vsyncpa [#allocation4], 0  ;;  %s682_s27 = smov [#allocation5]  }
   0x5   :  { %s34_s28 = sshll.u32 %s682_s27, 4  ;;  %s35_s28 = int_to_ptr.vmem [resolvable:$true] %s34_s28 }
   0x6   :  { %s540_s29 = scalar_lea.vmem %s35_s28, 32  ;;  %p545_p1 = scmp.lt.s32.totalorder %s35_s28, %s35_s28 }
   0x7   :  { %p541_p0 = scmp.ne.s32.totalorder %s35_s28, %s540_s29  ;;  %p546_p2 = scmp.lt.s32.totalorder %s540_s29, %s540_s29 }
   0x9   :  { %p547_p3 = por %p546_p2, %p545_p1 }
   0xb   :  { %p548_p4 = pnand %p547_p3, %p541_p0 }
   0xd   :  { %551 = shalt.err (!%p548_p4)
}
   0xe   :  { %37 = dma.hbm_to_vmem [thread:$0]  %s786_s1, 32, %s35_s28, [#allocation6]  }
   0xf   :  { %s683_s10 = smov [#allocation8]   ;;  %s684_s12 = smov [#allocation2]  }
  0x10   :  { %s55_s11 = sshll.u32 %s683_s10, 4  ;;  %s24_s13 = sshll.u32 %s684_s12, 4  ;;  %s56_s11 = int_to_ptr.vmem [resolvable:$true] %s55_s11  ;;  %s25_s13 = int_to_ptr.vmem [resolvable:$true] %s24_s13 }
  0x11   :  { %s560_s14 = scalar_lea.vmem %s56_s11, 512  ;;  %p565_p6 = scmp.lt.s32.totalorder %s56_s11, %s56_s11 }
  0x12   :  { %p561_p5 = scmp.ne.s32.totalorder %s56_s11, %s560_s14  ;;  %p566_p7 = scmp.lt.s32.totalorder %s560_s14, %s560_s14 }
  0x14   :  { %p567_p8 = por %p566_p7, %p565_p6 }
  0x16   :  { %p568_p9 = pnand %p567_p8, %p561_p5 }
  0x18   :  { %571 = shalt.err (!%p568_p9)
}
  0x19   :  { %s685_s15 = smov 128   ;;  %s686_s16 = smov 8  }
  0x1a   :  { %61 = dma.hbm_to_vmem [thread:$0]  %s788_s3, 512, %s56_s11, [#allocation9], %s685_s15, %s685_s15, %s686_s16  }
  0x1b   :  { %s580_s1 = scalar_lea.vmem %s25_s13, 32  ;;  %p585_p11 = scmp.lt.s32.totalorder %s25_s13, %s25_s13 }
  0x1c   :  { %p581_p10 = scmp.ne.s32.totalorder %s25_s13, %s580_s1  ;;  %p586_p12 = scmp.lt.s32.totalorder %s580_s1, %s580_s1 }
  0x1e   :  { %p587_p13 = por %p586_p12, %p585_p11 }
  0x20   :  { %p588_p0 = pnand %p587_p13, %p581_p10 }
  0x22   :  { %591 = shalt.err (!%p588_p0)
}
  0x23   :  { %27 = dma.hbm_to_vmem [thread:$0]  %s785_s0, 32, %s25_s13, [#allocation3]  }
  0x24   :  { %s687_s21 = smov [#allocation7]   ;;  %s688_s23 = smov [#allocation10]  }
  0x25   :  { %s43_s22 = sshll.u32 %s687_s21, 4  ;;  %s67_s24 = sshll.u32 %s688_s23, 4  ;;  %s44_s22 = int_to_ptr.vmem [resolvable:$true] %s43_s22  ;;  %s68_s24 = int_to_ptr.vmem [resolvable:$true] %s67_s24 }
  0x26   :  { %s600_s25 = scalar_lea.vmem %s44_s22, 256  ;;  %p605_p2 = scmp.lt.s32.totalorder %s44_s22, %s44_s22 }
  0x27   :  { %p601_p1 = scmp.ne.s32.totalorder %s44_s22, %s600_s25  ;;  %p606_p3 = scmp.lt.s32.totalorder %s600_s25, %s600_s25 }
  0x29   :  { %p607_p4 = por %p606_p3, %p605_p2 }
  0x2b   :  { %p608_p5 = pnand %p607_p4, %p601_p1 }
  0x2d   :  { %611 = shalt.err (!%p608_p5)
}
  0x2e   :  { %49 = dma.hbm_to_vmem [thread:$0]  %s787_s2, 256, %s44_s22, [#allocation6], %s685_s15, %s685_s15, %s686_s16  }
  0x2f   :  { %s620_s0 = scalar_lea.vmem %s68_s24, 256  ;;  %p625_p7 = scmp.lt.s32.totalorder %s68_s24, %s68_s24 }
  0x30   :  { %p621_p6 = scmp.ne.s32.totalorder %s68_s24, %s620_s0  ;;  %p626_p8 = scmp.lt.s32.totalorder %s620_s0, %s620_s0 }
  0x32   :  { %p627_p9 = por %p626_p8, %p625_p7 }
  0x34   :  { %p628_p10 = pnand %p627_p9, %p621_p6 }
  0x36   :  { %631 = shalt.err (!%p628_p10)
}
  0x37   :  { %73 = dma.hbm_to_vmem [thread:$0]  %s789_s4, 256, %s68_s24, [#allocation9], %s685_s15, %s685_s15, %s686_s16  }
  0x38   :  { %s689_s29 = smov [#allocation11]  }
  0x39   :  { %s79_s30 = sshll.u32 %s689_s29, 4  ;;  %s80_s30 = int_to_ptr.vmem [resolvable:$true] %s79_s30 }
  0x3a   :  { %s640_s9 = scalar_lea.vmem %s80_s30, 512  ;;  %p645_p12 = scmp.lt.s32.totalorder %s80_s30, %s80_s30 }
  0x3b   :  { %p641_p11 = scmp.ne.s32.totalorder %s80_s30, %s640_s9  ;;  %p646_p13 = scmp.lt.s32.totalorder %s640_s9, %s640_s9 }
  0x3d   :  { %p647_p0 = por %p646_p13, %p645_p12 }
  0x3f   :  { %p648_p1 = pnand %p647_p0, %p641_p11 }
  0x41   :  { %651 = shalt.err (!%p648_p1)
}
  0x42   :  { %85 = dma.hbm_to_vmem [thread:$0]  %s790_s5, 512, %s80_s30, [#allocation12], %s685_s15, %s685_s15, %s686_s16  }
  0x43   :  { %672 = dma.done.wait [#allocation3], 32  }
  0x44   :  { %673 = vsyncadd [#allocation3], 4294967264 }
  0x45   :  { %674 = dma.done.wait [#allocation6], 288  }
  0x46   :  { %675 = vsyncadd [#allocation6], 4294967008 }
  0x47   :  { %676 = dma.done.wait [#allocation9], 768  }
  0x48   :  { %677 = vsyncadd [#allocation9], 4294966528 }
  0x49   :  { %678 = dma.done.wait [#allocation12], 512  }
  0x4a   :  { %679 = vsyncadd [#allocation12], 4294966784  ;;  %v690_v0 = vmov 0.0   ;;  %vm691_vm0 = vmmov 0   ;;  %v115_v1 = vld [vmem:[#allocation8 + $0x18] sm:$0xff]  ;;  %v114_v2 = vld [vmem:[#allocation8 + $0x10] sm:$0xff] }
  0x4b   :  { %479 = vmatprep.subr.mxu0 %v690_v0  ;;  %490 = vmatprep.subr.mxu1 %v690_v0  ;;  %v111_v3 = vld [vmem:[#allocation7 + $0x8] sm:$0xff]  ;;  %v110_v4 = vld [vmem:[#allocation7] sm:$0xff]  ;;  %v108_v5 = vld [vmem:[#allocation2] sm:$0x3]  ;;  %vm190_vm1 = vcmask 130048   ;;  %vm116_vm2 = vcmask 261120  }
  0x4c   :  { %494 = vmatprep.mubr.msk.f32.mxu1 %vm691_vm0, %v690_v0  ;;  %487 = vmatprep.mubr.msk.f32.mxu0 %vm691_vm0, %v690_v0  ;;  %v113_v6 = vld [vmem:[#allocation8 + $0x8] sm:$0xff]  ;;  %v112_v8 = vld [vmem:[#allocation8] sm:$0xff]  ;;  %v275_v11 = vld [vmem:[#allocation11 + $0x8] sm:$0xff]  ;;  %vm436_vm3 = vcmask 254976  }
  0x4d   :  { %480 = vmatpush3.msra.mxu0 %v115_v1  ;;  %491 = vmatpush3.msra.mxu1 %v111_v3  ;;  %v277_v7 = vld [vmem:[#allocation11 + $0x18] sm:$0xff]  ;;  %v276_v10 = vld [vmem:[#allocation11 + $0x10] sm:$0xff]  ;;  %v274_v13 = vld [vmem:[#allocation11] sm:$0xff] }
  0x4e   :  { %481 = vmatprep.subr.mxu0 %v690_v0  ;;  %492 = vmatprep.subr.mxu1 %v690_v0  ;;  %v109_v9 = vld [vmem:[#allocation5] sm:$0x3]  ;;  %v272_v14 = vld [vmem:[#allocation10] sm:$0xff]  ;;  %v458_v18 = vld [vmem:[%s791_s6] ss:$0 sm:$0xff]  ;;  %s692_s6 = smov [#allocation13]  }
  0x4f   :  { %482 = vmatpush3.msra.mxu0 %v114_v2  ;;  %493 = vmatpush3.msra.mxu1 %v110_v4  ;;  %v273_v12 = vld [vmem:[#allocation10 + $0x8] sm:$0xff]  ;;  %s444_s13 = sshll.u32 %s692_s6, 4  ;;  %s445_s13 = int_to_ptr.vmem [resolvable:$true] %s444_s13 }
  0x50   :  { %483 = vmatprep.subr.mxu0 %v690_v0  ;;  %495 = vmatmul.mubr.msk.f32.vlgmr.msra.gmra.mxu1 %vm190_vm1, %v108_v5  ;;  %v461_v28 = vld [vmem:[%s792_s7] ss:$0 sm:$0xff]  ;;  %s652_s14 = scalar_lea.vmem %s445_s13, 32  ;;  %p657_p3 = scmp.lt.s32.totalorder %s445_s13, %s445_s13 }
  0x51   :  { %484 = vmatpush3.msra.mxu0 %v113_v6  ;;  %497 = vmatprep.subr.mxu1 %v690_v0  ;;  %p653_p2 = scmp.ne.s32.totalorder %s445_s13, %s652_s14  ;;  %p658_p4 = scmp.lt.s32.totalorder %s652_s14, %s652_s14 }
  0x52   :  { %485 = vmatprep.subr.mxu0 %v690_v0  ;;  %498 = vmatpush3.msra.mxu1 %v277_v7 }
  0x53   :  { %486 = vmatpush3.msra.mxu0 %v112_v8  ;;  %499 = vmatprep.subr.mxu1 %v690_v0  ;;  %p659_p5 = por %p658_p4, %p657_p3 }
  0x54   :  { %488 = vmatmul.mubr.msk.f32.vlgmr.msra.gmra.mxu0 %vm116_vm2, %v109_v9  ;;  %500 = vmatpush3.msra.mxu1 %v276_v10 }
  0x55   :  { %501 = vmatprep.subr.mxu1 %v690_v0  ;;  %508 = vmatprep.subr.mxu0 %v690_v0  ;;  %p660_p6 = pnand %p659_p5, %p653_p2 }
  0x56   :  { %502 = vmatpush3.msra.mxu1 %v275_v11  ;;  %509 = vmatpush3.msra.mxu0 %v273_v12 }
  0x57   :  { %503 = vmatprep.subr.mxu1 %v690_v0  ;;  %510 = vmatprep.subr.mxu0 %v690_v0 }
  0x58   :  { %504 = vmatpush3.msra.mxu1 %v274_v13  ;;  %505 = vmatprep.mubr.msk.f32.mxu1 %vm691_vm0, %v690_v0 }
  0x59   :  { %511 = vmatpush3.msra.mxu0 %v272_v14  ;;  %512 = vmatprep.mubr.msk.f32.mxu0 %vm691_vm0, %v690_v0 }
  0x5a   :  { %506 = vmatmul.mubr.msk.f32.vlgmr.msra.gmra.mxu1 %vm116_vm2, %v109_v9  ;;  %513 = vmatmul.mubr.msk.f32.vlgmr.msra.gmra.mxu0 %vm190_vm1, %v108_v5 }
 0x110   :  { %v260_v15 = vpop.f32.mrf.mxu1 }
 0x112   :  { %v496_v16 = vpop.f32.mrf.mxu1 }
 0x114   :  { %v186_v17 = vpop.f32.mrf.mxu0 }
 0x115   :  { %v261_v19 = vadd.f32 %v260_v15, %v186_v17 }
 0x116   :  { %v489_v20 = vpop.f32.mrf.mxu0 }
 0x117   :  { %v271_v21 = vadd.f32 %v458_v18, %v261_v19 }
 0x119   :  { %v462_v22 = vmul.f32 -1.442695, %v271_v21 }
 0x11a   :  { %v344_v23 = vpop.f32.mrf.mxu1  ;;  %v414_v24 = vpop.f32.mrf.mxu0 }
 0x11b   :  { %526 = vpow2.f32 %v462_v22  ;;  %v415_v27 = vadd.f32 %v414_v24, %v344_v23 }
 0x11c   :  { %v507_v25 = vpop.f32.mrf.mxu1  ;;  %v514_v26 = vpop.f32.mrf.mxu0 }
 0x11d   :  { %v425_v29 = vadd.f32 %v461_v28, %v415_v27 }
 0x11f   :  { %528 = vtanh.f32 %v425_v29 }
 0x128   :  { %v527_v30 = vpop.eup %526 }
 0x129   :  { %v429_v31 = vadd.f32 1.0, %v527_v30 }
 0x12b   :  { %530 = vrcp.f32 %v429_v31 }
 0x12c   :  { %v529_v32 = vpop.eup %528 }
 0x12d   :  { %v433_v33 = vsub.f32 %v529_v32, %v109_v9 }
 0x138   :  { %v531_v34 = vpop.eup %530 }
 0x139   :  { %v434_v35 = vmul.f32 %v531_v34, %v433_v33 }
 0x13b   :  { %v435_v36 = vadd.f32 %v434_v35, %v109_v9 }
 0x13d   :  { %437 = vst.msk [vmem:[#allocation13] sm:$0x3] %vm436_vm3, %v435_v36 }
 0x13e   :  { %663 = shalt.err (!%p660_p6)
}
 0x13f   :  { %447 = dma.vmem_to_hbm [thread:$0]  %s445_s13, 32, %s793_s8, [#allocation4]  }
 0x140   :  { %680 = dma.done.wait [#allocation4], 32  }
 0x141   :  { %681 = vsyncadd [#allocation4], 4294967264 }
 0x142   :  { %451 = vsyncpa [#allocation3], 1 }
 0x143   :  { %452 = vsyncpa [#allocation6], 1 }
 0x144   :  { %453 = vsyncpa [#allocation9], 1 }
 0x145   :  { %454 = vsyncpa [#allocation12], 1 }
 0x146   :  { %455 = vsyncpa [#allocation4], 1 }

</bundles_post_ra>
